<compile_context>
chip_gen: v6e
topology: v6e:2x2x1
jax: 0.10.0
libtpu: 0.0.40
codegen_flags: <defaults>
</compile_context>

<pallas_src>
import jax
import jax.numpy as jnp
from jax.experimental import pallas as pl
from jax.experimental.pallas import tpu as pltpu


def _round_up(x, m):
    return ((x + m - 1) // m) * m


def _choose_tiling(batch, tm_max):
    """Return (padded_batch, tm) with padded_batch % tm == 0 and small waste."""
    if batch <= 512:
        b_pad = _round_up(batch, 8)
        return b_pad, b_pad  # single tile; grid=(1,)
    # Large batches: pad to a multiple of 512 (<= ~6% waste worst case) and
    # grow tm by powers of two while (a) it still divides b_pad, (b) it stays
    # under tm_max, and (c) the grid keeps >= 2 steps (v7x megacore sharding).
    b_pad = _round_up(batch, 512)
    tm = 512
    while (tm * 2 <= tm_max) and (b_pad % (tm * 2) == 0) and (b_pad // (tm * 2) >= 2):
        tm *= 2
    return b_pad, tm


def _linear_kernel(c_ref, w_ref, b_ref, o_ref):
    # Single MXU dot with f32 accumulation; bias add on the VPU.
    acc = jnp.dot(c_ref[...], w_ref[...], preferred_element_type=jnp.float32)
    o_ref[...] = (acc + b_ref[...]).astype(o_ref.dtype)


def label_predictor_forward(c, w, b, *, tm_max=4096, out_dtype=jnp.float32):
    """y = c @ w + b  (PyTorch: fc1(c) with fc1.weight == w.T, fc1.bias == b).

    c: (B, concept_size)            float32 activations
    w: (concept_size, num_classes)  float32 (transposed PyTorch weight)
    b: (num_classes,) or (1, num_classes) float32 bias

    Returns (B, num_classes) logits in `out_dtype` (default float32).
    """
    B, K = c.shape
    K2, N = w.shape
    assert K == K2, (K, K2)
    b = jnp.asarray(b).reshape(1, N)  # PyTorch stores bias as (N,)

    b_pad, tm = _choose_tiling(B, tm_max)
    if b_pad != B:
        c = jnp.pad(c, ((0, b_pad - B), (0, 0)))

    grid = (b_pad // tm,)

    out = pl.pallas_call(
        _linear_kernel,
        out_shape=jax.ShapeDtypeStruct((b_pad, N), out_dtype),
        grid=grid,
        in_specs=[
            # Stream c per batch tile; K equals the full second dim -> legal.
            pl.BlockSpec((tm, K), lambda i: (i, 0)),
            # W and b are tiny and stay VMEM-resident across the grid.
            pl.BlockSpec((K, N), lambda i: (0, 0)),
            pl.BlockSpec((1, N), lambda i: (0, 0)),
        ],
        # Unpadded class dim: block last dim equals full array extent (legal);
        # the masked 16-lane store is far cheaper than 8x padded f32 writeback.
        out_specs=pl.BlockSpec((tm, N), lambda i: (i, 0)),
        compiler_params=pltpu.CompilerParams(
            # Batch tiles are independent -> shard across TCs on v7x.
            dimension_semantics=("parallel",),
        ),
    )(c, w, b)

    return out if b_pad == B else out[:B]


if __name__ == "__main__":
    # Small shapes consistent with the module: batch=8, concept_size=32, num_classes=16.
    batch = 8
    concept_size = 32
    num_classes = 16

    key = jax.random.PRNGKey(0)
    k_c, k_w, k_b = jax.random.split(key, 3)

    # Deterministic parameter init mimicking nn.Linear's uniform(-1/sqrt(in), 1/sqrt(in)).
    bound = 1.0 / jnp.sqrt(jnp.float32(concept_size))
    # PyTorch weight is (num_classes, concept_size); we store it transposed.
    w = jax.random.uniform(k_w, (concept_size, num_classes), jnp.float32, -bound, bound)
    b = jax.random.uniform(k_b, (num_classes,), jnp.float32, -bound, bound)

    c = jax.random.normal(k_c, (batch, concept_size), jnp.float32)

    y = label_predictor_forward(c, w, b)
    jax.block_until_ready(y)

    # Correctness check against plain JAX f32 reference (same semantics as fc1(c)).
    # Inputs stay f32; tolerance covers possible reduced-precision MXU passes.
    y_ref = c @ w + b.reshape(1, num_classes)
    assert y.shape == (batch, num_classes)
    assert jnp.allclose(y, y_ref, atol=1e-2, rtol=1e-2)

    print("KERNEL_OK")
</pallas_src>

<mosaic_0001>
module attributes {stable_mosaic.version = 11 : i64} {
  func.func @_linear_kernel(%arg0: i32, %arg1: memref<8x32xf32, #tpu.memory_space<vmem>>, %arg2: memref<32x16xf32, #tpu.memory_space<vmem>>, %arg3: memref<1x16xf32, #tpu.memory_space<vmem>>, %arg4: memref<8x16xf32, #tpu.memory_space<vmem>>) attributes {dimension_semantics = [#tpu.dimension_semantics<parallel>], iteration_bounds = array<i64: 1>, scalar_prefetch = 0 : i64, scratch_operands = 0 : i64, tpu.core_type = #tpu.core_type<tc>, window_params = [{transform_indices = @transform_0, window_bounds = array<i64: 8, 32>}, {pipeline_mode = #tpu.pipeline_mode<synchronous>, transform_indices = @transform_1, window_bounds = array<i64: 32, 16>}, {pipeline_mode = #tpu.pipeline_mode<synchronous>, transform_indices = @transform_2, window_bounds = array<i64: 1, 16>}, {transform_indices = @transform_3, window_bounds = array<i64: 8, 16>}]} {
    %c0 = arith.constant 0 : index
    %c0_0 = arith.constant 0 : index
    %0 = vector.load %arg1[%c0, %c0_0] : memref<8x32xf32, #tpu.memory_space<vmem>>, vector<8x32xf32>
    %c0_1 = arith.constant 0 : index
    %c0_2 = arith.constant 0 : index
    %1 = vector.load %arg2[%c0_1, %c0_2] : memref<32x16xf32, #tpu.memory_space<vmem>>, vector<32x16xf32>
    %cst = arith.constant dense<0.000000e+00> : vector<8x16xf32>
    %2 = tpu.matmul %0, %1, %cst {dimension_numbers = #tpu.dot_dimension_numbers<[1], [0], [0], [1], [0, 0, 1, 1], [], []>} : vector<8x32xf32>, vector<32x16xf32>, vector<8x16xf32> -> vector<8x16xf32>
    %c0_3 = arith.constant 0 : index
    %c0_4 = arith.constant 0 : index
    %3 = vector.load %arg3[%c0_3, %c0_4] : memref<1x16xf32, #tpu.memory_space<vmem>>, vector<1x16xf32>
    %4 = vector.broadcast %3 : vector<1x16xf32> to vector<8x16xf32>
    %5 = arith.addf %2, %4 : vector<8x16xf32>
    %c0_5 = arith.constant 0 : index
    %c0_6 = arith.constant 0 : index
    %6 = vector.load %arg4[%c0_5, %c0_6] : memref<8x16xf32, #tpu.memory_space<vmem>>, vector<8x16xf32>
    tpu.vector_store %arg4[%c0_5, %c0_6], %5 {strides = array<i32>} : memref<8x16xf32, #tpu.memory_space<vmem>>, vector<8x16xf32>,
    return
  }
  func.func @transform_0(%arg0: i32) -> (i32, i32) {
    %c0_i32 = arith.constant 0 : i32
    %c0_i32_0 = arith.constant 0 : i32
    return %arg0, %c0_i32 : i32, i32
  }
  func.func @transform_1(%arg0: i32) -> (i32, i32) {
    %c0_i32 = arith.constant 0 : i32
    %c0_i32_0 = arith.constant 0 : i32
    %c0_i32_1 = arith.constant 0 : i32
    return %c0_i32, %c0_i32_0 : i32, i32
  }
  func.func @transform_2(%arg0: i32) -> (i32, i32) {
    %c0_i32 = arith.constant 0 : i32
    %c0_i32_0 = arith.constant 0 : i32
    %c0_i32_1 = arith.constant 0 : i32
    return %c0_i32, %c0_i32_0 : i32, i32
  }
  func.func @transform_3(%arg0: i32) -> (i32, i32) {
    %c0_i32 = arith.constant 0 : i32
    %c0_i32_0 = arith.constant 0 : i32
    return %arg0, %c0_i32 : i32, i32
  }
}

</mosaic_0001>

<bundles_post_ra>
// kernel: tpu_custom_call.1
= control target key start
LH: loop header
LB: loop body
LE: loop exit
PB: predicated region body
PF: predicated region fallthrough
CT: control target
= control target key end

     0   :  { %v160_v1 = vmov 0.0   ;;  %vm161_vm0 = vmmov 0   ;;  %s204_s0 = inlined_call_operand.vmem [shape: f32[8,32], index: 0, kind: input, shape index: {}]   ;;  %s205_s1 = inlined_call_operand.vmem [shape: f32[32,16], index: 1, kind: input, shape index: {}]   ;;  %s206_s2 = inlined_call_operand.vmem [shape: f32[1,16], index: 2, kind: input, shape index: {}]   ;;  %s207_s3 = inlined_call_operand.hbm [shape: f32[8,16], index: 3, kind: output, shape index: {}]  }
   0x1   :  { %v19_v0 = vld [vmem:[%s205_s1 + $0x18] sm:$0xff]  ;;  %124 = vmatprep.subr.mxu0 %v160_v1  ;;  %v18_v2 = vld [vmem:[%s205_s1 + $0x10] sm:$0xff]  ;;  %132 = vmatprep.mubr.msk.f32.mxu0 %vm161_vm0, %v160_v1 }
   0x2   :  { %125 = vmatpush3.msra.mxu0 %v19_v0 }
   0x3   :  { %8 = vsyncpa [#allocation3], 0  ;;  %126 = vmatprep.subr.mxu0 %v160_v1  ;;  %v17_v3 = vld [vmem:[%s205_s1 + $0x8] sm:$0xff]  ;;  %v16_v4 = vld [vmem:[%s205_s1] sm:$0xff]  ;;  %vm27_vm1 = vcmask 261120   ;;  %s162_s24 = smov [#allocation2]  }
   0x4   :  { %127 = vmatpush3.msra.mxu0 %v18_v2  ;;  %v15_v5 = vld [vmem:[%s204_s0] sm:$0xff]  ;;  %s109_s25 = sshll.u32 %s162_s24, 4  ;;  %vm101_vm2 = vcmask 130048   ;;  %s110_s25 = int_to_ptr.vmem [resolvable:$true] %s109_s25 }
   0x5   :  { %128 = vmatprep.subr.mxu0 %v160_v1  ;;  %v117_v6 = vld [vmem:[%s206_s2] ss:$0 sm:$0xff]  ;;  %s138_s1 = scalar_lea.vmem %s110_s25, 128  ;;  %p143_p1 = scmp.lt.s32.totalorder %s110_s25, %s110_s25 }
   0x6   :  { %129 = vmatpush3.msra.mxu0 %v17_v3  ;;  %p139_p0 = scmp.ne.s32.totalorder %s110_s25, %s138_s1  ;;  %p144_p2 = scmp.lt.s32.totalorder %s138_s1, %s138_s1 }
   0x7   :  { %130 = vmatprep.subr.mxu0 %v160_v1 }
   0x8   :  { %131 = vmatpush3.msra.mxu0 %v16_v4  ;;  %p145_p3 = por %p144_p2, %p143_p1 }
   0x9   :  { %133 = vmatmul.mubr.msk.f32.vlgmr.msra.gmra.mxu0 %vm27_vm1, %v15_v5 }
   0xa   :  { %p146_p4 = pnand %p145_p3, %p139_p0 }
  0xc9   :  { %v97_v7 = vpop.f32.mrf.mxu0 }
  0xca   :  { %v98_v8 = vadd.f32 %v117_v6, %v97_v7 }
  0xcb   :  { %v134_v9 = vpop.f32.mrf.mxu0 }
  0xcc   :  { %102 = vst.msk [vmem:[#allocation2] sm:$0xff] %vm101_vm2, %v98_v8 }
  0xcd   :  { %149 = shalt.err (!%p146_p4)
}
  0xce   :  { %112 = dma.vmem_to_hbm [thread:$0]  %s110_s25, 128, %s207_s3, [#allocation3]  }
  0xcf   :  { %158 = dma.done.wait [#allocation3], 128  }
  0xd0   :  { %159 = vsyncadd [#allocation3], 4294967168 }
  0xd1   :  { %116 = vsyncpa [#allocation3], 1 }

</bundles_post_ra>
